<compile_context>
chip_gen: v6e
topology: v6e:2x2x1
jax: 0.10.0
libtpu: 0.0.40
codegen_flags: <defaults>
</compile_context>

<pallas_src>
import functools
import math

import jax
import jax.numpy as jnp
from jax import lax
from jax.experimental import pallas as pl
from jax.experimental.pallas import tpu as pltpu


_LANE = 128
_SUBLANE = 8
# Safe on v5e/v6e (128 MiB physical) and v7x (64 MiB physical) VMEM.
_VMEM_LIMIT = 48 * 1024 * 1024
_ROW_TILE_CAP = 256        # keeps the FFN intermediate / block buffers small on v7x
_MIN_GRID = 4              # feed both v7x TensorCores + give the pipeline depth


def _round_up(n, m):
    return ((n + m - 1) // m) * m


def _choose_tm(m, cap=_ROW_TILE_CAP, min_grid=_MIN_GRID):
    """Row tile: multiple of 8, <= cap, preferring exact divisors, and small
    enough that the grid has >= min_grid steps when m allows it."""
    if m <= _SUBLANE:
        return m
    target = _round_up((m + min_grid - 1) // min_grid, _SUBLANE)
    cap = max(_SUBLANE, min(cap, target))
    best = None
    t = _SUBLANE
    lim = min(m, cap)
    while t <= lim:
        if m % t == 0:
            best = t
        t += _SUBLANE
    if best is not None:
        return best
    # fall back to an 8-aligned tile; Pallas masks the partial edge block
    # (safe: every kernel below is row-independent).
    return max(_SUBLANE, min(cap, (m // _SUBLANE) * _SUBLANE))


def _cparams(n_grid_axes):
    return pltpu.CompilerParams(
        dimension_semantics=("parallel",) * n_grid_axes,
        vmem_limit_bytes=_VMEM_LIMIT,
    )


# ----------------------------- Pallas kernels ------------------------------

def _embed_pe_kernel(x_ref, w_ref, b_ref, pe_ref, o_ref):
    # embedding matmul with the positional-encoding add fused in (free VPU filler)
    y = jnp.dot(x_ref[...].astype(jnp.bfloat16), w_ref[...],
                preferred_element_type=jnp.float32)
    o_ref[...] = (y + b_ref[...] + pe_ref[...]).astype(o_ref.dtype)


def _linear_kernel(x_ref, w_ref, b_ref, o_ref):
    x = x_ref[...]
    if x.dtype != jnp.bfloat16:
        x = x.astype(jnp.bfloat16)
    y = jnp.dot(x, w_ref[...], preferred_element_type=jnp.float32)
    o_ref[...] = (y + b_ref[...]).astype(o_ref.dtype)


def _attn_block_kernel(h_ref, wqkv_ref, bqkv_ref, wo_ref, bo_ref, g_ref, bln_ref,
                       o_ref, *, num_heads, d_head, scale, eps):
    # One batch item: fused QKV projection -> MHSA -> Wo proj -> residual -> LN.
    # Everything (QKV [S,3D], scores [S,S], head outputs) lives only in vregs/VMEM.
    h = h_ref[...]                                    # (S, D) bf16
    d_model = num_heads * d_head
    qkv = jnp.dot(h, wqkv_ref[...], preferred_element_type=jnp.float32)
    qkv = qkv + bqkv_ref[...]                         # (S, 3D) f32

    acc = jnp.zeros((h.shape[0], d_model), jnp.float32)
    for hd in range(num_heads):
        q = qkv[:, hd * d_head:(hd + 1) * d_head].astype(jnp.bfloat16)
        k = qkv[:, d_model + hd * d_head: d_model + (hd + 1) * d_head].astype(jnp.bfloat16)
        v = qkv[:, 2 * d_model + hd * d_head: 2 * d_model + (hd + 1) * d_head].astype(jnp.bfloat16)
        # contraction on last dim of both operands (no in-kernel transpose)
        s = lax.dot_general(q, k, (((1,), (1,)), ((), ())),
                            preferred_element_type=jnp.float32) * scale
        s = s - jnp.max(s, axis=-1, keepdims=True)
        p = jnp.exp(s)
        p = p * pl.reciprocal(jnp.sum(p, axis=-1, keepdims=True), approx=True)
        head_out = jnp.dot(p.astype(jnp.bfloat16), v,
                           preferred_element_type=jnp.float32)
        # project through the per-head row block of Wo and accumulate:
        # sum_h (head_out_h @ Wo[h*dh:(h+1)*dh, :]) == concat(head_outs) @ Wo
        acc = acc + jnp.dot(head_out.astype(jnp.bfloat16),
                            wo_ref[hd * d_head:(hd + 1) * d_head, :],
                            preferred_element_type=jnp.float32)

    y = acc + bo_ref[...] + h.astype(jnp.float32)     # residual (post-norm)
    mean = jnp.mean(y, axis=-1, keepdims=True)
    var = jnp.mean(jnp.square(y - mean), axis=-1, keepdims=True)
    yn = (y - mean) * lax.rsqrt(var + eps)
    o_ref[...] = (yn * g_ref[...] + bln_ref[...]).astype(o_ref.dtype)


def _ffn_add_ln_kernel(x_ref, w1_ref, b1_ref, w2_ref, b2_ref, g_ref, bln_ref,
                       o_ref, *, eps):
    # W1 matmul + ReLU + W2 matmul + residual + LayerNorm.
    # The (TM, d_ff) intermediate lives only in VMEM/vregs, and is bf16.
    x = x_ref[...]                                    # (TM, D) bf16
    f = jnp.dot(x, w1_ref[...], preferred_element_type=jnp.float32)
    f = jnp.maximum(f + b1_ref[...], 0.0).astype(jnp.bfloat16)
    y = jnp.dot(f, w2_ref[...], preferred_element_type=jnp.float32)
    y = y + b2_ref[...] + x.astype(jnp.float32)
    mean = jnp.mean(y, axis=-1, keepdims=True)
    var = jnp.mean(jnp.square(y - mean), axis=-1, keepdims=True)
    yn = (y - mean) * lax.rsqrt(var + eps)
    o_ref[...] = (yn * g_ref[...] + bln_ref[...]).astype(o_ref.dtype)


# ----------------------------- Pallas wrappers ------------------------------

def pallas_embed_pe(x, w_bf16, b, pe):
    """x: [B, S, Din] f32, w: [Din, D] bf16, pe: [S, D] f32 -> [B, S, D] bf16."""
    B, S, Din = x.shape
    D = w_bf16.shape[1]
    assert D % _LANE == 0, "d_model must be a multiple of 128"
    return pl.pallas_call(
        _embed_pe_kernel,
        out_shape=jax.ShapeDtypeStruct((B, S, D), jnp.bfloat16),
        grid=(B,),
        in_specs=[
            pl.BlockSpec((None, S, Din), lambda bi: (bi, 0, 0)),
            pl.BlockSpec((Din, D), lambda bi: (0, 0)),
            pl.BlockSpec((1, D), lambda bi: (0, 0)),
            pl.BlockSpec((S, D), lambda bi: (0, 0)),     # shared across batch
        ],
        out_specs=pl.BlockSpec((None, S, D), lambda bi: (bi, 0, 0)),
        compiler_params=_cparams(1),
    )(x, w_bf16, b.reshape(1, D), pe)


def pallas_attn_block(h3, w_qkv, b_qkv, wo, bo, gamma, beta, num_heads, eps=1e-5):
    """h3: [B, S, D] bf16 -> [B, S, D] bf16 (fused QKV+MHSA+Wo+residual+LN)."""
    B, S, D = h3.shape
    d_head = D // num_heads
    kernel = functools.partial(_attn_block_kernel, num_heads=num_heads,
                               d_head=d_head, scale=1.0 / math.sqrt(d_head),
                               eps=eps)
    return pl.pallas_call(
        kernel,
        out_shape=jax.ShapeDtypeStruct((B, S, D), jnp.bfloat16),
        grid=(B,),
        in_specs=[
            pl.BlockSpec((None, S, D), lambda bi: (bi, 0, 0)),
            pl.BlockSpec((D, 3 * D), lambda bi: (0, 0)),
            pl.BlockSpec((1, 3 * D), lambda bi: (0, 0)),
            pl.BlockSpec((D, D), lambda bi: (0, 0)),
            pl.BlockSpec((1, D), lambda bi: (0, 0)),
            pl.BlockSpec((1, D), lambda bi: (0, 0)),
            pl.BlockSpec((1, D), lambda bi: (0, 0)),
        ],
        out_specs=pl.BlockSpec((None, S, D), lambda bi: (bi, 0, 0)),
        compiler_params=_cparams(1),
    )(h3, w_qkv, b_qkv.reshape(1, 3 * D), wo, bo.reshape(1, D),
      gamma.reshape(1, D), beta.reshape(1, D))


def pallas_ffn_add_ln(x2d, w1, b1, w2, b2, gamma, beta, eps=1e-5):
    """x2d: [M, D] bf16 -> [M, D] bf16 (fused FFN + residual + LN)."""
    M, D = x2d.shape
    F = w1.shape[1]
    TM = _choose_tm(M)
    kernel = functools.partial(_ffn_add_ln_kernel, eps=eps)
    return pl.pallas_call(
        kernel,
        out_shape=jax.ShapeDtypeStruct((M, D), jnp.bfloat16),
        grid=(pl.cdiv(M, TM),),
        in_specs=[
            pl.BlockSpec((TM, D), lambda i: (i, 0)),
            pl.BlockSpec((D, F), lambda i: (0, 0)),
            pl.BlockSpec((1, F), lambda i: (0, 0)),
            pl.BlockSpec((F, D), lambda i: (0, 0)),
            pl.BlockSpec((1, D), lambda i: (0, 0)),
            pl.BlockSpec((1, D), lambda i: (0, 0)),
            pl.BlockSpec((1, D), lambda i: (0, 0)),
        ],
        out_specs=pl.BlockSpec((TM, D), lambda i: (i, 0)),
        compiler_params=_cparams(1),
    )(x2d, w1, b1.reshape(1, F), w2, b2.reshape(1, D),
      gamma.reshape(1, D), beta.reshape(1, D))


def pallas_linear(x2d, w_bf16, b, out_dtype=jnp.float32):
    """x2d: [M, K] -> [M, N] (N already lane-padded in the weight)."""
    M, K = x2d.shape
    N = w_bf16.shape[1]
    TM = _choose_tm(M)
    return pl.pallas_call(
        _linear_kernel,
        out_shape=jax.ShapeDtypeStruct((M, N), out_dtype),
        grid=(pl.cdiv(M, TM),),
        in_specs=[
            pl.BlockSpec((TM, K), lambda i: (i, 0)),
            pl.BlockSpec((K, N), lambda i: (0, 0)),
            pl.BlockSpec((1, N), lambda i: (0, 0)),
        ],
        out_specs=pl.BlockSpec((TM, N), lambda i: (i, 0)),
        compiler_params=_cparams(1),
    )(x2d, w_bf16, b.reshape(1, N))


# ----------------------------- Model glue -----------------------------------

def sinusoidal_pe(max_len, d_model):
    pos = jnp.arange(max_len, dtype=jnp.float32)[:, None]
    i = jnp.arange(0, d_model, 2, dtype=jnp.float32)
    div = jnp.exp(-(jnp.log(10000.0)) * i / d_model)
    pe = jnp.zeros((max_len, d_model), jnp.float32)
    pe = pe.at[:, 0::2].set(jnp.sin(pos * div))
    pe = pe.at[:, 1::2].set(jnp.cos(pos * div))
    return pe


def init_params(key, cfg):
    def dense(k, fan_in, fan_out):
        w = jax.random.normal(k, (fan_in, fan_out), jnp.float32) * 0.02
        b = jnp.zeros((fan_out,), jnp.float32)
        return w, b

    keys = jax.random.split(key, 2 + cfg["num_layers"])
    params = {}

    d, dff = cfg["d_model"], cfg["d_ff"]

    # embedding (weights pre-cast to bf16 once; biases stay f32)
    emb_w, emb_b = dense(keys[0], cfg["input_dim"], d)
    params["emb_w"] = emb_w.astype(jnp.bfloat16)
    params["emb_b"] = emb_b

    # output projection, lane-padded once at init (161 -> 256 at real scale)
    out_w, out_b = dense(keys[1], d, cfg["freq_bins"])
    n_pad = _round_up(cfg["freq_bins"], _LANE)
    params["out_w"] = jnp.pad(out_w, ((0, 0), (0, n_pad - cfg["freq_bins"]))
                              ).astype(jnp.bfloat16)
    params["out_b"] = jnp.pad(out_b, (0, n_pad - cfg["freq_bins"]))

    layers = []
    for li in range(cfg["num_layers"]):
        lk = jax.random.split(keys[2 + li], 6)
        layer = {}
        wq, bq = dense(lk[0], d, d)
        wk, bk = dense(lk[1], d, d)
        wv, bv = dense(lk[2], d, d)
        wo, bo = dense(lk[3], d, d)
        w1, b1 = dense(lk[4], d, dff)
        w2, b2 = dense(lk[5], dff, d)
        # fused QKV weight/bias (one lane-dense [D, 3D] projection), bf16 weights
        layer["w_qkv"] = jnp.concatenate([wq, wk, wv], axis=1).astype(jnp.bfloat16)
        layer["b_qkv"] = jnp.concatenate([bq, bk, bv], axis=0)
        layer["wo"] = wo.astype(jnp.bfloat16)
        layer["bo"] = bo
        layer["w1"] = w1.astype(jnp.bfloat16)
        layer["b1"] = b1
        layer["w2"] = w2.astype(jnp.bfloat16)
        layer["b2"] = b2
        layer["ln1_g"] = jnp.ones((d,), jnp.float32)
        layer["ln1_b"] = jnp.zeros((d,), jnp.float32)
        layer["ln2_g"] = jnp.ones((d,), jnp.float32)
        layer["ln2_b"] = jnp.zeros((d,), jnp.float32)
        layers.append(layer)
    params["layers"] = layers
    return params


def transformer_echo_cancellation_forward(x, params, cfg):
    """x: [B, S, input_dim] -> [B, S, freq_bins]  (mask=None, eval mode)."""
    B, S, _ = x.shape
    D = cfg["d_model"]
    H = cfg["num_heads"]

    # embedding + positional encoding fused (dropout == identity in eval);
    # PE passed once as [S, D] and shared across the batch grid axis.
    pe = sinusoidal_pe(cfg["max_len"], D)[:S]
    h3 = pallas_embed_pe(x, params["emb_w"], params["emb_b"], pe)      # [B,S,D] bf16

    for layer in params["layers"]:
        # ---- fused QKV -> MHSA -> Wo + residual + LayerNorm (post-norm) ----
        h3 = pallas_attn_block(h3, layer["w_qkv"], layer["b_qkv"],
                               layer["wo"], layer["bo"],
                               layer["ln1_g"], layer["ln1_b"], H)

        # ---- fused FFN + residual + LayerNorm ----
        h2 = pallas_ffn_add_ln(h3.reshape(B * S, D),
                               layer["w1"], layer["b1"],
                               layer["w2"], layer["b2"],
                               layer["ln2_g"], layer["ln2_b"])
        h3 = h2.reshape(B, S, D)

    # output projection (lane-padded weight, slice padded columns outside)
    out = pallas_linear(h3.reshape(B * S, D), params["out_w"], params["out_b"])
    out = out[:, :cfg["freq_bins"]]
    return out.reshape(B, S, cfg["freq_bins"])


# ----------------------------- Main ------------------------------------------

if __name__ == "__main__":
    cfg = dict(
        input_dim=64,    # small analogue of 322 (= 2 * freq_bins)
        d_model=128,     # small analogue of 512
        num_layers=2,    # small analogue of 6
        num_heads=4,     # small analogue of 8
        d_ff=256,        # small analogue of 1024
        max_len=16,      # small analogue of 50
        freq_bins=32,    # small analogue of 161
    )
    B, S = 2, 8

    key = jax.random.PRNGKey(0)
    k_param, k_x = jax.random.split(key)
    params = init_params(k_param, cfg)
    x = jax.random.normal(k_x, (B, S, cfg["input_dim"]), jnp.float32)

    out = transformer_echo_cancellation_forward(x, params, cfg)
    out = jax.block_until_ready(out)

    assert out.shape == (B, S, cfg["freq_bins"]), out.shape
    assert bool(jnp.all(jnp.isfinite(out)))
    print("KERNEL_OK")
</pallas_src>

<mosaic_0001>
module attributes {stable_mosaic.version = 11 : i64} {
  func.func @_embed_pe_kernel(%arg0: i32, %arg1: memref<1x8x64xf32, #tpu.memory_space<vmem>>, %arg2: memref<64x128xbf16, #tpu.memory_space<vmem>>, %arg3: memref<1x128xf32, #tpu.memory_space<vmem>>, %arg4: memref<8x128xf32, #tpu.memory_space<vmem>>, %arg5: memref<1x8x128xbf16, #tpu.memory_space<vmem>>) attributes {dimension_semantics = [#tpu.dimension_semantics<parallel>], iteration_bounds = array<i64: 2>, scalar_prefetch = 0 : i64, scratch_operands = 0 : i64, tpu.core_type = #tpu.core_type<tc>, window_params = [{transform_indices = @transform_0, window_bounds = array<i64: 1, 8, 64>}, {pipeline_mode = #tpu.pipeline_mode<synchronous>, transform_indices = @transform_1, window_bounds = array<i64: 64, 128>}, {pipeline_mode = #tpu.pipeline_mode<synchronous>, transform_indices = @transform_2, window_bounds = array<i64: 1, 128>}, {pipeline_mode = #tpu.pipeline_mode<synchronous>, transform_indices = @transform_3, window_bounds = array<i64: 8, 128>}, {transform_indices = @transform_4, window_bounds = array<i64: 1, 8, 128>}]} {
    %c0 = arith.constant 0 : index
    %c0_0 = arith.constant 0 : index
    %c0_1 = arith.constant 0 : index
    %0 = vector.load %arg1[%c0, %c0_0, %c0_1] : memref<1x8x64xf32, #tpu.memory_space<vmem>>, vector<1x8x64xf32>
    %1 = vector.shape_cast %0 : vector<1x8x64xf32> to vector<8x64xf32>
    %2 = arith.truncf %1 : vector<8x64xf32> to vector<8x64xbf16>
    %c0_2 = arith.constant 0 : index
    %c0_3 = arith.constant 0 : index
    %3 = vector.load %arg2[%c0_2, %c0_3] : memref<64x128xbf16, #tpu.memory_space<vmem>>, vector<64x128xbf16>
    %cst = arith.constant dense<0.000000e+00> : vector<8x128xf32>
    %4 = tpu.matmul %2, %3, %cst {dimension_numbers = #tpu.dot_dimension_numbers<[1], [0], [0], [1], [0, 0, 1, 1], [], []>} : vector<8x64xbf16>, vector<64x128xbf16>, vector<8x128xf32> -> vector<8x128xf32>
    %c0_4 = arith.constant 0 : index
    %c0_5 = arith.constant 0 : index
    %5 = vector.load %arg3[%c0_4, %c0_5] : memref<1x128xf32, #tpu.memory_space<vmem>>, vector<1x128xf32>
    %6 = vector.broadcast %5 : vector<1x128xf32> to vector<8x128xf32>
    %7 = arith.addf %4, %6 : vector<8x128xf32>
    %c0_6 = arith.constant 0 : index
    %c0_7 = arith.constant 0 : index
    %8 = vector.load %arg4[%c0_6, %c0_7] : memref<8x128xf32, #tpu.memory_space<vmem>>, vector<8x128xf32>
    %9 = arith.addf %7, %8 : vector<8x128xf32>
    %10 = arith.truncf %9 : vector<8x128xf32> to vector<8x128xbf16>
    %c0_8 = arith.constant 0 : index
    %c0_9 = arith.constant 0 : index
    %c0_10 = arith.constant 0 : index
    %11 = vector.load %arg5[%c0_8, %c0_9, %c0_10] : memref<1x8x128xbf16, #tpu.memory_space<vmem>>, vector<1x8x128xbf16>
    %12 = vector.shape_cast %11 : vector<1x8x128xbf16> to vector<8x128xbf16>
    %13 = vector.shape_cast %10 : vector<8x128xbf16> to vector<1x8x128xbf16>
    tpu.vector_store %arg5[%c0_8, %c0_9, %c0_10], %13 {strides = array<i32>} : memref<1x8x128xbf16, #tpu.memory_space<vmem>>, vector<1x8x128xbf16>,
    return
  }
  func.func @transform_0(%arg0: i32) -> (i32, i32, i32) {
    %c0_i32 = arith.constant 0 : i32
    %c0_i32_0 = arith.constant 0 : i32
    %c0_i32_1 = arith.constant 0 : i32
    return %arg0, %c0_i32, %c0_i32_0 : i32, i32, i32
  }
  func.func @transform_1(%arg0: i32) -> (i32, i32) {
    %c0_i32 = arith.constant 0 : i32
    %c0_i32_0 = arith.constant 0 : i32
    %c0_i32_1 = arith.constant 0 : i32
    return %c0_i32, %c0_i32_0 : i32, i32
  }
  func.func @transform_2(%arg0: i32) -> (i32, i32) {
    %c0_i32 = arith.constant 0 : i32
    %c0_i32_0 = arith.constant 0 : i32
    %c0_i32_1 = arith.constant 0 : i32
    return %c0_i32, %c0_i32_0 : i32, i32
  }
  func.func @transform_3(%arg0: i32) -> (i32, i32) {
    %c0_i32 = arith.constant 0 : i32
    %c0_i32_0 = arith.constant 0 : i32
    %c0_i32_1 = arith.constant 0 : i32
    return %c0_i32, %c0_i32_0 : i32, i32
  }
  func.func @transform_4(%arg0: i32) -> (i32, i32, i32) {
    %c0_i32 = arith.constant 0 : i32
    %c0_i32_0 = arith.constant 0 : i32
    %c0_i32_1 = arith.constant 0 : i32
    return %arg0, %c0_i32, %c0_i32_0 : i32, i32, i32
  }
}

</mosaic_0001>

<bundles_post_ra>
// kernel: tpu_custom_call.1
= control target key start
LH: loop header
LB: loop body
LE: loop exit
PB: predicated region body
PF: predicated region fallthrough
CT: control target
= control target key end

     0   :  { %9 = vsyncpa [#allocation3], 0  ;;  %s905_s0 = inlined_call_operand.hbm [shape: f32[2,8,64], index: 0, kind: input, shape index: {}]   ;;  %s906_s1 = inlined_call_operand.hbm [shape: bf16[64,128], index: 1, kind: input, shape index: {}]   ;;  %s907_s2 = inlined_call_operand.vmem [shape: f32[1,128], index: 2, kind: input, shape index: {}]   ;;  %s908_s3 = inlined_call_operand.hbm [shape: f32[8,128], index: 3, kind: input, shape index: {}]   ;;  %s909_s4 = inlined_call_operand.hbm [shape: bf16[2,8,128], index: 4, kind: output, shape index: {}]  }
   0x1   :  { %11 = vsyncpa [#allocation3 + $0x1], 0 }
   0x2   :  { %12 = vsyncpa [#allocation6], 0 }
   0x3   :  { %13 = vsyncpa [#allocation4], 0 }
   0x4   :  { %15 = vsyncpa [#allocation4 + $0x1], 0  ;;  %s730_s15 = smov 0   ;;  %s732_s16 = smov 0  }
   0x5   :  { %s734_s17 = smov 0   ;;  %s736_s18 = smov 0  }
   0x6 LB: > { %s751_s19 = sadd.s32 4294967295, %s695_s18   ;;  %s433_s20 = sadd.s32 4294967294, %s695_s18   ;;  %s695_s18 = sphi %s736_s18, %s931_s18   ;;  %s691_s17 = sphi %s734_s17, %s930_s17   ;;  %s687_s16 = sphi %s732_s16, %s929_s16   ;;  %s683_s15 = sphi %s730_s15, %s928_s15  }
   0x7   : > { %p41_p0 = scmp.ne.s32.totalorder %s687_s16, %s683_s15  ;;  %p910_p1 = scmp.eq.s32.totalorder %s751_s19, 0 }
   0x8   : > { %p134_p3 = scmp.eq.s32.totalorder %s433_s20, 1  ;;  %p434_p5 = scmp.ge.s32.totalorder %s695_s18, 1 }
   0x9   : > { %p760_p4 = por %p910_p1, %p41_p0  ;;  %p141_p7 = scmp.lt.s32.totalorder %s695_s18, 3 }
   0xa   : > { %p765_p6 = por %p134_p3, %p41_p0  ;;  %s697_s24 = smov [#allocation5]  }
   0xb   : > { %s914_s21 = scalar_select %p760_p4, 1, 0 }
   0xc   : > { %s915_s22 = scalar_select %p765_p6, 1, 0 }
   0xd   : > { %p770_p8 = pnand %p434_p5, %p141_p7  ;;  %s153_s25 = sshll.u32 %s697_s24, 4  ;;  %s154_s25 = int_to_ptr.vmem [resolvable:$true] %s153_s25 }
   0xe   : > { %s698_s27 = smov [#allocation7]   ;;  %s558_s29 = scalar_lea.vmem %s154_s25, 512 }
   0xf   : > { %s916_s23 = scalar_select %p770_p8, 1, 0 }
  0x10   : > { %p484_p9 = pneg %p770_p8  ;;  %s170_s28 = sshll.u32 %s698_s27, 4  ;;  %s171_s28 = int_to_ptr.vmem [resolvable:$true] %s170_s28 }
  0x11   : > { %p559_p13 = scmp.ne.s32.totalorder %s154_s25, %s558_s29  ;;  %p566_p5 = scmp.lt.s32.totalorder %s154_s25, %s154_s25 }
  0x12   : > { %p779_p11 = pnand %p484_p9, %p910_p1  ;;  %p567_p7 = scmp.lt.s32.totalorder %s558_s29, %s558_s29 }
  0x14   : > { %p549_p12 = pneg %p779_p11  ;;  %p568_p10 = por %p567_p7, %p566_p5 }
  0x16   : > { %p561_p0 = pnand %p559_p13, %p549_p12 }
  0x18   : > { %p562_p3 = pneg %p561_p0 }
  0x1a   : > { %p569_p9 = pnand %p568_p10, %p562_p3 }
  0x1c   : > { %572 = shalt.err (!%p569_p9)
}
  0x1d   : > { %s699_s30 = smov 64   ;;  %s700_s5 = smov 4  }
  0x1e   : > { %487 = dma.hbm_to_vmem [thread:$0]  (!%p779_p11), %s906_s1, 512, %s154_s25, [#allocation6], %s699_s30, %s699_s30, %s700_s5  }
  0x1f   : > { %s584_s8 = scalar_lea.vmem %s171_s28, 128  ;;  %p592_p2 = scmp.lt.s32.totalorder %s171_s28, %s171_s28 }
  0x20   : > { %p585_p1 = scmp.ne.s32.totalorder %s171_s28, %s584_s8  ;;  %p593_p6 = scmp.lt.s32.totalorder %s584_s8, %s584_s8 }
  0x22   : > { %p587_p13 = pnand %p585_p1, %p549_p12  ;;  %p594_p5 = por %p593_p6, %p592_p2 }
  0x24   : > { %p588_p0 = pneg %p587_p13 }
  0x26   : > { %p595_p10 = pnand %p594_p5, %p588_p0 }
  0x28   : > { %598 = shalt.err (!%p595_p10)
}
  0x29   : > { %490 = dma.hbm_to_vmem [thread:$0]  (!%p779_p11), %s908_s3, 128, %s171_s28, [#allocation6]  }
  0x2a   : > { %s802_s11 = sadd.s32 1, %s695_s18   ;;  %s28_s12 = sadd.s32 1, %s691_s17 }
  0x2b   : > { %s25_s13 = ssub.s32 %s695_s18, %s802_s11  ;;  %p35_p1 = scmp.ne.s32.totalorder %s691_s17, %s687_s16 }
  0x2c   : > { %p26_p2 = scmp.eq.s32.totalorder %s25_s13, 0  ;;  %p36_p6 = scmp.eq.s32.totalorder %s695_s18, 0 }
  0x2d   : > { %p918_p12 = scmp.eq.s32.totalorder %s751_s19, 1  ;;  %p501_p7 = scmp.lt.s32.totalorder %s695_s18, 2 }
  0x2e   : > { %s818_s20 = scalar_select %p26_p2, %s691_s17, %s28_s12  }
  0x2f   : > { %p812_p3 = por %p918_p12, %p35_p1  ;;  %p37_p9 = por %p36_p6, %p35_p1 }
  0x30   : > { %s181_s24 = sand.u32 1, %s691_s17   ;;  %s439_s26 = sshll.u32 %s695_s18, 7 }
  0x31   : > { %s919_s14 = scalar_select %p812_p3, 1, 0 }
  0x32   : > { %s438_s25 = sshll.u32 %s181_s24, 3  ;;  %s825_s29 = scalar_lea.hbm %s905_s0, %s439_s26 }
  0x33   : > { %s185_s30 = scalar_lea.vmem [#allocation2], %s438_s25  ;;  %p827_p11 = pnand %p501_p7, %p37_p9 }
  0x34   : > { %s192_s5 = sshll.u32 %s185_s30, 4  ;;  %s182_s7 = scalar_lea.sflag [#allocation3], %s181_s24  ;;  %s193_s5 = int_to_ptr.vmem [resolvable:$true] %s192_s5 }
  0x35   : > { %s599_s8 = scalar_lea.hbm %s825_s29, 128  ;;  %p601_p0 = pneg %p827_p11 }
  0x36   : > { %p600_p13 = scmp.ne.s32.totalorder %s825_s29, %s599_s8  ;;  %s604_s12 = scalar_lea.hbm %s905_s0, 256 }
  0x37   : > { %p605_p1 = scmp.lt.s32.totalorder %s825_s29, %s905_s0  ;;  %p606_p2 = scmp.lt.s32.totalorder %s604_s12, %s599_s8 }
  0x38   : > { %p602_p5 = pnand %p601_p0, %p600_p13 }
  0x39   : > { %p607_p6 = por %p606_p2, %p605_p1 }
  0x3a   : > { %p603_p10 = pneg %p602_p5 }
  0x3c   : > { %p608_p12 = pnand %p607_p6, %p603_p10 }
  0x3e   : > { %611 = shalt.err (!%p608_p12)
}
  0x3f   : > { %s612_s26 = scalar_lea.vmem %s193_s5, 128  ;;  %s701_s24 = smov [#allocation2]  }
  0x40   : > { %p613_p7 = scmp.ne.s32.totalorder %s193_s5, %s612_s26  ;;  %s617_s27 = sshll.u32 %s701_s24, 4  ;;  %s618_s27 = int_to_ptr.vmem [resolvable:$false] %s617_s27 }
  0x41   : > { %s619_s28 = scalar_lea.vmem %s618_s27, 256  ;;  %p620_p13 = scmp.lt.s32.totalorder %s193_s5, %s618_s27 }
  0x42   : > { %p615_p9 = pnand %p613_p7, %p601_p0  ;;  %p621_p5 = scmp.lt.s32.totalorder %s619_s28, %s612_s26 }
  0x44   : > { %p616_p3 = pneg %p615_p9  ;;  %p622_p4 = por %p621_p5, %p620_p13 }
  0x46   : > { %p623_p8 = pnand %p622_p4, %p616_p3 }
  0x48   : > { %626 = shalt.err (!%p623_p8)
}
  0x49   : > { %494 = dma.hbm_to_vmem [thread:$0]  (!%p827_p11), %s825_s29, 128, %s193_s5, %s182_s7  }
  0x4a   : > { %p921_p10 = scmp.ne.s32.totalorder %s916_s23, 0 }
  0x4b   : > { %s848_s30 = sand.u32 (!%p921_p10), 1, %s687_s16   ;;  %p922_p0 = scmp.ne.s32.totalorder (!%p921_p10), %s914_s21, 0 }
  0x4c   : > { %201 = sbr.rel (%p921_p10) target bundleno = 314 (0x13a), region = 36  ;;  %s441_s8 = sshll.u32 (!%p921_p10), %s848_s30, 3 }
  0x4d   : > { %s204_s9 = scalar_lea.sflag (!%p921_p10), [#allocation3], %s848_s30  ;;  %s207_s10 = scalar_lea.vmem (!%p921_p10), [#allocation2], %s441_s8 }
  0x51   : > { %670 = dma.done.wait (%p922_p0), %s204_s9, 128  }
  0x52   : > { %672 = vsyncadd (%p922_p0), %s204_s9, 4294967168  ;;  %p923_p4 = scmp.eq.s32.totalorder %s751_s19, 0 }
  0x54   : > { %674 = dma.done.wait (%p923_p4), [#allocation6], 640   ;;  %p924_p8 = pmov %p923_p4 }
  0x55   : > { %v702_v0 = vmov 0.0   ;;  %vm703_vm0 = vmmov 0   ;;  %v543_v1 = vld [vmem:[#allocation5 + $0x18] sm:$0xff]   ;;  %v544_v2 = vld [vmem:[#allocation5 + $0x10] sm:$0xff]   ;;  %v545_v3 = vld [vmem:[#allocation5 + $0x8] sm:$0xff]   ;;  %vm282_vm1 = vcmask 523264  }
  0x56   : > { %676 = vsyncadd (%p924_p8), [#allocation6], 4294966656  ;;  %460 = vmatprep.subr.bf16.mxu0 %v702_v0  ;;  %468 = vmatprep.mubr.msk.bf16.mxu0 %vm703_vm0, %v702_v0  ;;  %v546_v4 = vld [vmem:[#allocation5] sm:$0xff]   ;;  %v241_v5 = vld [vmem:[%s207_s10] sm:$0xff]  ;;  %s444_s21 = sshll.u32 %s848_s30, 2  ;;  %s452_s5 = sshll.u32 %s751_s19, 6 }
  0x57   : > { %461 = vmatpush3.bf16.msra.mxu0 %v543_v1  ;;  %v242_v6 = vpack.c.bf16 %v241_v5, %v241_v5  ;;  %v445_v7 = vld [vmem:[%s907_s2] ss:$0 sm:$0xff]  ;;  %v326_v9 = vld [vmem:[#allocation7] sm:$0xff]  ;;  %s239_s6 = scalar_lea.vmem [#allocation8], %s444_s21  ;;  %s868_s25 = scalar_lea.hbm %s909_s4, %s452_s5 }
  0x58   : > { %462 = vmatprep.subr.bf16.mxu0 %v702_v0  ;;  %s344_s7 = sshll.u32 %s239_s6, 4  ;;  %s331_s26 = scalar_lea.sflag [#allocation4], %s848_s30  ;;  %s345_s7 = int_to_ptr.vmem [resolvable:$true] %s344_s7 }
  0x59   : > { %s627_s24 = scalar_lea.vmem %s345_s7, 64  ;;  %p925_p11 = scmp.ne.s32.totalorder %s919_s14, 0 }
  0x5a   : > { %p628_p3 = scmp.ne.s32.totalorder %s345_s7, %s627_s24  ;;  %s704_s19 = smov [#allocation8]  }
  0x5b   : > { %463 = vmatpush3.bf16.msra.mxu0 %v544_v2  ;;  %s631_s27 = sshll.u32 %s704_s19, 4  ;;  %s632_s27 = int_to_ptr.vmem [resolvable:$false] %s631_s27 }
  0x5c   : > { %464 = vmatprep.subr.bf16.mxu0 %v702_v0  ;;  %p629_p1 = pnand %p628_p3, %p925_p11  ;;  %s633_s28 = scalar_lea.vmem %s632_s27, 128 }
  0x5d   : > { %p634_p6 = scmp.lt.s32.totalorder %s345_s7, %s632_s27  ;;  %p635_p12 = scmp.lt.s32.totalorder %s633_s28, %s627_s24 }
  0x5e   : > { %p630_p2 = pneg %p629_p1 }
  0x5f   : > { %465 = vmatpush3.bf16.msra.mxu0 %v545_v3  ;;  %p636_p7 = por %p635_p12, %p634_p6 }
  0x60   : > { %466 = vmatprep.subr.bf16.mxu0 %v702_v0 }
  0x61   : > { %p637_p9 = pnand %p636_p7, %p630_p2 }
  0x63   : > { %467 = vmatpush3.bf16.msra.mxu0 %v546_v4 }
  0x66   : > { %469 = vmatmul.mubr.msk.bf16.vlgmr.msra.gmra.mxu0 %vm282_vm1, %v242_v6 }
 0x126   : > { %v320_v8 = vpop.f32.mrf.mxu0 }
 0x127   : > { %v321_v10 = vadd.f32 %v445_v7, %v320_v8 }
 0x128   : > { %v470_v11 = vpop.f32.mrf.mxu0 }
 0x129   : > { %v327_v12 = vadd.f32 %v326_v9, %v321_v10 }
 0x12a   : > { %v323_v13 = vpop.f32.mrf.mxu0 }
 0x12b   : > { %v328_v14 = vpack.c.bf16 %v327_v12, %v327_v12 }
 0x12c   : > { %v471_v15 = vpop.f32.mrf.mxu0 }
 0x12d   : > { %329 = vst [vmem:[%s239_s6] sm:$0xf] %v328_v14 }
 0x12e   : > { %640 = shalt.err (!%p637_p9)
}
 0x12f   : > { %s641_s8 = scalar_lea.hbm %s868_s25, 64  ;;  %s645_s10 = scalar_lea.hbm %s909_s4, 128 }
 0x130   : > { %p642_p13 = scmp.ne.s32.totalorder %s868_s25, %s641_s8  ;;  %p646_p0 = scmp.lt.s32.totalorder %s868_s25, %s909_s4 }
 0x131   : > { %p647_p4 = scmp.lt.s32.totalorder %s645_s10, %s641_s8 }
 0x132   : > { %p643_p5 = pnand %p642_p13, %p925_p11 }
 0x133   : > { %p648_p8 = por %p647_p4, %p646_p0 }
 0x134   : > { %p644_p10 = pneg %p643_p5 }
 0x136   : > { %p649_p3 = pnand %p648_p8, %p644_p10 }
 0x138   : > { %652 = shalt.err (!%p649_p3)
}
 0x139   : > { %482 = dma.vmem_to_hbm [thread:$0]  (%p925_p11), %s345_s7, 64, %s868_s25, %s331_s26  }
 0x13a PF: > { %s356_s29 = sand.u32 1, %s683_s15   ;;  %p926_p1 = scmp.ne.s32.totalorder %s915_s22, 0 }
 0x13b   : > { %p927_p2 = scmp.ge.s32.totalorder %s695_s18, 2  ;;  %s357_s5 = scalar_lea.sflag [#allocation4], %s356_s29 }
 0x13d   : > { %p496_p6 = pnand %p927_p2, %p926_p1 }
 0x13f   : > { %p497_p12 = pneg %p496_p6 }
 0x141   : > { %678 = dma.done.wait (%p497_p12), %s357_s5, 64  }
 0x142   : > { %680 = vsyncadd (%p497_p12), %s357_s5, 4294967232  ;;  %p18_p7 = scmp.ge.s32.totalorder %s802_s11, 4   ;;  %s928_s15 = smov %s687_s16 }
 0x143   : > { %s929_s16 = smov %s691_s17  ;;  %s930_s17 = smov %s818_s20 }
 0x144   : > { %s931_s18 = smov %s802_s11  ;;  %20 = sbr.rel (!%p18_p7) target bundleno = 6 (0x6), region = 89 }
 0x149   :  { %362 = vsyncpa [#allocation3], 1 }
 0x14a   :  { %364 = vsyncpa [#allocation3 + $0x1], 1 }
 0x14b   :  { %365 = vsyncpa [#allocation6], 1 }
 0x14c   :  { %366 = vsyncpa [#allocation4], 1 }
 0x14d   :  { %368 = vsyncpa [#allocation4 + $0x1], 1 }

</bundles_post_ra>
